<compile_context>
chip_gen: v7x
topology: tpu7x:2x2x1
jax: 0.10.0
libtpu: 0.0.40
codegen_flags: <defaults>
</compile_context>

<pallas_src>
import jax
import jax.numpy as jnp
from jax.experimental import pallas as pl
from jax.experimental.pallas import tpu as pltpu

EPS = 1e-5
_MIB = 1024 * 1024


def _round_up(x, m):
    return ((x + m - 1) // m) * m


def _vmem_budget_and_limit():
    """Generation-aware VMEM tile budget + scoped limit (bytes)."""
    try:
        cap = int(pltpu.get_tpu_info().vmem_capacity_bytes)
    except Exception:
        cap = 64 * _MIB                      # conservative (v7x per-TC) fallback
    if cap >= 100 * _MIB:                    # v5e / v6e: 128 MiB physical
        return 96 * _MIB, 110 * _MIB
    return 38 * _MIB, 50 * _MIB              # v7x: 64 MiB per TensorCore


# --------------------------------------------------------------------------
# Kernel
# --------------------------------------------------------------------------
def _make_fc_kernel(compute_dtype):
    def _fc_kernel(x_ref, w_ref, b_ref, alpha_ref, o_ref):
        # x_ref: (tm, idim) native dtype, w_ref: (idim, tn) bf16,
        # b_ref: (1, tn) f32, alpha_ref: (1,) f32 in SMEM.
        x = x_ref[...].astype(compute_dtype)                 # in-kernel cast (no extra HBM pass)
        y = jnp.dot(x, w_ref[...], preferred_element_type=jnp.float32)   # MXU, f32 acc
        y = y + b_ref[...]                                   # fused linear bias + BN shift
        alpha = alpha_ref[0]                                 # shared PReLU slope
        y = jnp.where(y >= 0.0, y, alpha * y)
        o_ref[...] = y.astype(o_ref.dtype)
    return _fc_kernel


# --------------------------------------------------------------------------
# Tile selection
# --------------------------------------------------------------------------
def _choose_row_tile(M, idim, odim, x_bytes, w_bytes, out_bytes, vmem_budget):
    """Row tile for the 1-D (resident-weight) grid."""
    tm_cap = 2048 if vmem_budget > 64 * _MIB else 1024
    tm = min(_round_up(M, 8), tm_cap)

    # Enough pipeline steps for DMA overlap + both v7x TensorCores.
    target_steps = 8
    want = min(target_steps, pl.cdiv(M, 8))
    if want > 1 and pl.cdiv(M, tm) < want:
        tm = max(8, _round_up(pl.cdiv(M, want), 8))

    def fits(tm_):
        w = 2 * idim * odim * w_bytes                 # resident fused weight (buffers)
        bb = 2 * 8 * _round_up(odim, 128) * 4         # bias tile, sublane/lane padded f32
        xa = 2 * tm_ * idim * x_bytes                 # activation tiles (double-buffered)
        xc = tm_ * idim * 2                           # in-kernel bf16 copy of the x tile
        oa = 2 * tm_ * odim * out_bytes               # output tiles (double-buffered)
        ep = tm_ * odim * 4                           # f32 matmul/PReLU epilogue intermediate
        return w + bb + xa + xc + oa + ep <= vmem_budget

    while not fits(tm) and tm > 8:
        tm = max(8, tm // 2)
    if not fits(tm):
        raise ValueError(
            f"FC Pallas kernel: minimum row tile does not fit VMEM "
            f"(idim={idim}, odim={odim}); K-tiling not implemented.")
    return tm


def _choose_tiles_2d(M, idim, odim_p, x_bytes, w_bytes, out_bytes, vmem_budget):
    """(tm, tn) for the 2-D fallback (large fused weight)."""
    tn = min(odim_p, 512)
    tm_cap = 2048 if vmem_budget > 64 * _MIB else 1024
    tm = min(_round_up(M, 8), tm_cap)
    want = min(8, pl.cdiv(M, 8))
    if want > 1 and pl.cdiv(M, tm) < want:
        tm = max(8, _round_up(pl.cdiv(M, want), 8))

    def fits(tm_, tn_):
        w = 2 * idim * tn_ * w_bytes
        xa = 2 * tm_ * idim * x_bytes
        xc = tm_ * idim * 2
        oa = 2 * tm_ * tn_ * out_bytes
        ep = tm_ * tn_ * 4
        bb = 2 * 8 * tn_ * 4
        return w + xa + xc + oa + ep + bb <= vmem_budget

    while not fits(tm, tn) and tm > 8:
        tm = max(8, tm // 2)
    while not fits(tm, tn) and tn > 128:
        tn = max(128, tn // 2)
    if not fits(tm, tn):
        raise ValueError(
            f"FC Pallas kernel: minimum 2-D tile does not fit VMEM "
            f"(idim={idim}, odim_p={odim_p}); K-tiling not implemented.")
    return tm, tn


# --------------------------------------------------------------------------
# pallas_call wrappers
# --------------------------------------------------------------------------
def _fc_rows_resident(x2d, w_fused, b_fused, alpha, *, out_dtype, compute_dtype,
                      tm, vmem_limit):
    """1-D row grid: fused weight/bias stay resident, unpadded output."""
    M, idim = x2d.shape
    odim = w_fused.shape[1]
    grid = (pl.cdiv(M, tm),)
    return pl.pallas_call(
        _make_fc_kernel(compute_dtype),
        out_shape=jax.ShapeDtypeStruct((M, odim), out_dtype),
        grid=grid,
        in_specs=[
            pl.BlockSpec((tm, idim), lambda i: (i, 0)),        # activation row tile
            pl.BlockSpec((idim, odim), lambda i: (0, 0)),      # resident fused weight
            pl.BlockSpec((1, odim), lambda i: (0, 0)),         # resident fused bias
            pl.BlockSpec(memory_space=pltpu.MemorySpace.SMEM), # PReLU alpha scalar
        ],
        out_specs=pl.BlockSpec((tm, odim), lambda i: (i, 0)),
        compiler_params=pltpu.CompilerParams(
            dimension_semantics=("parallel",),
            vmem_limit_bytes=vmem_limit),
    )(x2d, w_fused, b_fused, alpha)


def _fc_cols_tiled(x2d, w_fused, b_fused, alpha, *, out_dtype, compute_dtype,
                   tm, tn, vmem_limit):
    """2-D fallback for large fused weights (column axis outer => weight tile
    loaded once per column block; activations re-fetched per column block)."""
    M, idim = x2d.shape
    odim_p = w_fused.shape[1]
    grid = (pl.cdiv(odim_p, tn), pl.cdiv(M, tm))
    return pl.pallas_call(
        _make_fc_kernel(compute_dtype),
        out_shape=jax.ShapeDtypeStruct((M, odim_p), out_dtype),
        grid=grid,
        in_specs=[
            pl.BlockSpec((tm, idim), lambda j, i: (i, 0)),
            pl.BlockSpec((idim, tn), lambda j, i: (0, j)),
            pl.BlockSpec((1, tn), lambda j, i: (0, j)),
            pl.BlockSpec(memory_space=pltpu.MemorySpace.SMEM),
        ],
        out_specs=pl.BlockSpec((tm, tn), lambda j, i: (i, j)),
        compiler_params=pltpu.CompilerParams(
            dimension_semantics=("parallel", "parallel"),
            vmem_limit_bytes=vmem_limit),
    )(x2d, w_fused, b_fused, alpha)


# --------------------------------------------------------------------------
# Parameter folding (do once per inference graph and cache)
# --------------------------------------------------------------------------
def _fold_bn(params):
    """Fold eval-mode BN + linear bias into a single fused weight/bias (f32)."""
    w_t, b, gamma, beta, mean, var, alpha = params
    scale = (gamma.astype(jnp.float32) *
             jax.lax.rsqrt(var.astype(jnp.float32) + EPS))              # (1, odim)
    w_fused = w_t.astype(jnp.float32) * scale                           # (idim, odim)
    b_fused = (b.astype(jnp.float32) - mean.astype(jnp.float32)) * scale \
              + beta.astype(jnp.float32)                                # (1, odim)
    return w_fused, b_fused, alpha.astype(jnp.float32)


def prepare_fc_params(params, compute_dtype=jnp.bfloat16):
    """Precompute fused (bf16 weight, f32 bias, f32 alpha). Cache for inference."""
    w_fused, b_fused, alpha = _fold_bn(params)
    return w_fused.astype(compute_dtype), b_fused, alpha


# --------------------------------------------------------------------------
# Forward (mirrors FC.forward with flatten=None)
# --------------------------------------------------------------------------
def fc_forward(x, fused_params, dim=-1, compute_dtype=jnp.bfloat16, out_dtype=None):
    """transpose(dim) -> fused(Linear+BN) -> PReLU -> transpose back."""
    w_fused, b_fused, alpha = fused_params
    out_dtype = x.dtype if out_dtype is None else out_dtype

    x_t = jnp.swapaxes(x, -1, dim)               # transpose(ans, dim); no-op for dim=-1
    lead = x_t.shape[:-1]
    idim = x_t.shape[-1]
    x2d = x_t.reshape(-1, idim)
    M = x2d.shape[0]
    odim = w_fused.shape[1]

    x_bytes = jnp.dtype(x.dtype).itemsize
    w_bytes = jnp.dtype(w_fused.dtype).itemsize
    out_bytes = jnp.dtype(out_dtype).itemsize
    vmem_budget, vmem_limit = _vmem_budget_and_limit()

    # Small fused weight (the common case): keep it resident, 1-D row grid,
    # unpadded output (full-dim last block) => no pad / slice passes.
    if idim * odim * w_bytes <= 4 * _MIB:
        tm = _choose_row_tile(M, idim, odim, x_bytes, w_bytes, out_bytes, vmem_budget)
        y2d = _fc_rows_resident(
            x2d, w_fused, b_fused, alpha,
            out_dtype=out_dtype, compute_dtype=compute_dtype,
            tm=tm, vmem_limit=vmem_limit)
    else:
        # Large weight fallback: lane-pad odim, 2-D grid, slice afterwards.
        odim_p = max(128, _round_up(odim, 128))
        w_p = jnp.pad(w_fused, ((0, 0), (0, odim_p - odim))) if odim_p != odim else w_fused
        b_p = jnp.pad(b_fused, ((0, 0), (0, odim_p - odim))) if odim_p != odim else b_fused
        tm, tn = _choose_tiles_2d(M, idim, odim_p, x_bytes, w_bytes, out_bytes, vmem_budget)
        y2d = _fc_cols_tiled(
            x2d, w_p, b_p, alpha,
            out_dtype=out_dtype, compute_dtype=compute_dtype,
            tm=tm, tn=tn, vmem_limit=vmem_limit)[:, :odim]

    y = y2d.reshape(*lead, odim)
    return jnp.swapaxes(y, -1, dim)              # transpose back


# --------------------------------------------------------------------------
# References
# --------------------------------------------------------------------------
def fc_reference(x, params, dim=-1, compute_dtype=jnp.bfloat16):
    """Pure-JAX reference mirroring the kernel's numeric path (bf16 matmul, f32 epilogue)."""
    w_fused, b_fused, alpha = _fold_bn(params)
    x_t = jnp.swapaxes(x, -1, dim)
    y = jnp.dot(x_t.astype(compute_dtype), w_fused.astype(compute_dtype),
                preferred_element_type=jnp.float32) + b_fused[0]
    y = jnp.where(y >= 0.0, y, alpha[0] * y).astype(x.dtype)
    return jnp.swapaxes(y, -1, dim)


def fc_reference_f32(x, params, dim=-1):
    """Full-precision reference (module semantics)."""
    w_t, b, gamma, beta, mean, var, alpha = params
    x_t = jnp.swapaxes(x, -1, dim)
    y = x_t @ w_t + b[0]
    y = (y - mean[0]) * (gamma[0] / jnp.sqrt(var[0] + EPS)) + beta[0]
    y = jnp.where(y >= 0.0, y, alpha[0] * y)
    return jnp.swapaxes(y, -1, dim)


# --------------------------------------------------------------------------
if __name__ == "__main__":
    # Small shapes consistent with FC(idim=32, odim=64) on a (B, N, idim) tensor.
    B, N, idim, odim = 2, 8, 32, 64
    key = jax.random.PRNGKey(0)
    kx, kw, kb, kg, kbe, km, kv = jax.random.split(key, 7)

    x = jax.random.normal(kx, (B, N, idim), dtype=jnp.float32)

    # Deterministic synthetic parameters (shapes follow the module's __init__).
    w = jax.random.normal(kw, (odim, idim), dtype=jnp.float32) * 0.1   # nn.Linear weight [odim, idim]
    w_t = jnp.asarray(w.T)                                             # [idim, odim] for x @ W
    b = jax.random.normal(kb, (1, odim), dtype=jnp.float32) * 0.1
    gamma = 1.0 + 0.1 * jax.random.normal(kg, (1, odim), dtype=jnp.float32)
    beta = 0.05 * jax.random.normal(kbe, (1, odim), dtype=jnp.float32)
    mean = 0.1 * jax.random.normal(km, (1, odim), dtype=jnp.float32)
    var = 0.5 + jnp.abs(jax.random.normal(kv, (1, odim), dtype=jnp.float32)) * 0.1
    alpha = jnp.array([0.25], dtype=jnp.float32)                       # PReLU(init=0.25)

    params = (w_t, b, gamma, beta, mean, var, alpha)
    fused = prepare_fc_params(params)        # fold/cast once; cache for inference

    out = fc_forward(x, fused, dim=-1)
    out = jax.block_until_ready(out)
    assert out.shape == (B, N, odim), out.shape
    assert out.dtype == x.dtype, out.dtype

    # Tight check against a reference that follows the same numeric path.
    ref = fc_reference(x, params, dim=-1)
    assert jnp.allclose(out, ref, atol=1e-4, rtol=1e-4), "mismatch vs. bf16-path reference"

    # Loose check against the full-precision module semantics.
    ref32 = fc_reference_f32(x, params, dim=-1)
    assert jnp.allclose(out, ref32, atol=5e-2, rtol=5e-2), "mismatch vs. f32 reference"

    # Exercise dim=-2 (transpose path) as well.
    out2 = jax.block_until_ready(fc_forward(jnp.swapaxes(x, -1, -2), fused, dim=-2))
    assert out2.shape == (B, odim, N), out2.shape
    assert jnp.allclose(jnp.swapaxes(out2, -1, -2), ref, atol=1e-4, rtol=1e-4), \
        "mismatch on dim=-2 path"

    print("KERNEL_OK")
</pallas_src>

<mosaic_0001>
module attributes {stable_mosaic.version = 11 : i64} {
  func.func @_fc_kernel(%arg0: i32, %arg1: memref<8x32xf32, #tpu.memory_space<vmem>>, %arg2: memref<32x64xbf16, #tpu.memory_space<vmem>>, %arg3: memref<1x64xf32, #tpu.memory_space<vmem>>, %arg4: memref<1xf32, #tpu.memory_space<smem>>, %arg5: memref<8x64xf32, #tpu.memory_space<vmem>>) attributes {dimension_semantics = [#tpu.dimension_semantics<parallel>], iteration_bounds = array<i64: 2>, scalar_prefetch = 0 : i64, scratch_operands = 0 : i64, tpu.core_type = #tpu.core_type<tc>, window_params = [{transform_indices = @transform_0, window_bounds = array<i64: 8, 32>}, {pipeline_mode = #tpu.pipeline_mode<synchronous>, transform_indices = @transform_1, window_bounds = array<i64: 32, 64>}, {pipeline_mode = #tpu.pipeline_mode<synchronous>, transform_indices = @transform_2, window_bounds = array<i64: 1, 64>}, {transform_indices = @transform_3, window_bounds = array<i64: 1>}, {transform_indices = @transform_4, window_bounds = array<i64: 8, 64>}]} {
    %c0 = arith.constant 0 : index
    %c0_0 = arith.constant 0 : index
    %0 = vector.load %arg1[%c0, %c0_0] : memref<8x32xf32, #tpu.memory_space<vmem>>, vector<8x32xf32>
    %1 = arith.truncf %0 : vector<8x32xf32> to vector<8x32xbf16>
    %c0_1 = arith.constant 0 : index
    %c0_2 = arith.constant 0 : index
    %2 = vector.load %arg2[%c0_1, %c0_2] : memref<32x64xbf16, #tpu.memory_space<vmem>>, vector<32x64xbf16>
    %cst = arith.constant dense<0.000000e+00> : vector<8x64xf32>
    %3 = tpu.matmul %1, %2, %cst {dimension_numbers = #tpu.dot_dimension_numbers<[1], [0], [0], [1], [0, 0, 1, 1], [], []>} : vector<8x32xbf16>, vector<32x64xbf16>, vector<8x64xf32> -> vector<8x64xf32>
    %c0_3 = arith.constant 0 : index
    %c0_4 = arith.constant 0 : index
    %4 = vector.load %arg3[%c0_3, %c0_4] : memref<1x64xf32, #tpu.memory_space<vmem>>, vector<1x64xf32>
    %5 = vector.broadcast %4 : vector<1x64xf32> to vector<8x64xf32>
    %6 = arith.addf %3, %5 : vector<8x64xf32>
    %c0_5 = arith.constant 0 : index
    %7 = memref.load %arg4[%c0_5] : memref<1xf32, #tpu.memory_space<smem>>
    %cst_6 = arith.constant 0.000000e+00 : f32
    %8 = vector.broadcast %cst_6 : f32 to vector<8x64xf32>
    %9 = arith.cmpf oge, %6, %8 : vector<8x64xf32>
    %10 = vector.broadcast %7 : f32 to vector<8x64xf32>
    %11 = arith.mulf %10, %6 : vector<8x64xf32>
    %12 = arith.select %9, %6, %11 : vector<8x64xi1>, vector<8x64xf32>
    %c0_7 = arith.constant 0 : index
    %c0_8 = arith.constant 0 : index
    %13 = vector.load %arg5[%c0_7, %c0_8] : memref<8x64xf32, #tpu.memory_space<vmem>>, vector<8x64xf32>
    tpu.vector_store %arg5[%c0_7, %c0_8], %12 {strides = array<i32>} : memref<8x64xf32, #tpu.memory_space<vmem>>, vector<8x64xf32>,
    return
  }
  func.func @transform_0(%arg0: i32) -> (i32, i32) {
    %c0_i32 = arith.constant 0 : i32
    %c0_i32_0 = arith.constant 0 : i32
    return %arg0, %c0_i32 : i32, i32
  }
  func.func @transform_1(%arg0: i32) -> (i32, i32) {
    %c0_i32 = arith.constant 0 : i32
    %c0_i32_0 = arith.constant 0 : i32
    %c0_i32_1 = arith.constant 0 : i32
    return %c0_i32, %c0_i32_0 : i32, i32
  }
  func.func @transform_2(%arg0: i32) -> (i32, i32) {
    %c0_i32 = arith.constant 0 : i32
    %c0_i32_0 = arith.constant 0 : i32
    %c0_i32_1 = arith.constant 0 : i32
    return %c0_i32, %c0_i32_0 : i32, i32
  }
  func.func @transform_3(%arg0: i32) -> i32 {
    %c0_i32 = arith.constant 0 : i32
    %c0_i32_0 = arith.constant 0 : i32
    return %c0_i32 : i32
  }
  func.func @transform_4(%arg0: i32) -> (i32, i32) {
    %c0_i32 = arith.constant 0 : i32
    %c0_i32_0 = arith.constant 0 : i32
    return %arg0, %c0_i32 : i32, i32
  }
}

</mosaic_0001>

<bundles_post_ra>
// kernel: tpu_custom_call.1
= control target key start
LH: loop header
LB: loop body
LE: loop exit
PB: predicated region body
PF: predicated region fallthrough
CT: control target
= control target key end

     0   :  { %s856_s0 = inlined_call_operand.hbm [shape: f32[16,32], index: 0, kind: input, shape index: {}]   ;;  %s857_s1 = inlined_call_operand.hbm [shape: bf16[32,64], index: 1, kind: input, shape index: {}]   ;;  %s858_s2 = inlined_call_operand.vmem [shape: f32[1,64], index: 2, kind: input, shape index: {}]   ;;  %s859_s3 = inlined_call_operand.<no memory space> [shape: f32[1], index: 3, kind: input, shape index: {}]   ;;  %s860_s4 = inlined_call_operand.hbm [shape: f32[16,64], index: 4, kind: output, shape index: {}]  }
   0x1   :  { %9 = sst [smem:[#allocation2]] %s859_s3 }
   0x2   :  { %10 = vsyncpa [#allocation4], 0 }
   0x3   :  { %12 = vsyncpa [#allocation4 + $0x1], 0 }
   0x4   :  { %13 = vsyncpa [#allocation7], 0 }
   0x5   :  { %14 = vsyncpa [#allocation5], 0 }
   0x6   :  { %16 = vsyncpa [#allocation5 + $0x1], 0  ;;  %s657_s17 = smov 0   ;;  %s659_s18 = smov 0  }
   0x7   :  { %s661_s19 = smov 0   ;;  %s663_s20 = smov 0  }
   0x8 LB: > { %s678_s3 = sadd.s32 4294967295, %s620_s20   ;;  %s400_s21 = sadd.s32 4294967294, %s620_s20   ;;  %s620_s20 = sphi %s663_s20, %s880_s20   ;;  %s616_s19 = sphi %s661_s19, %s879_s19   ;;  %s612_s18 = sphi %s659_s18, %s878_s18   ;;  %s608_s17 = sphi %s657_s17, %s877_s17  }
   0x9   : > { %p42_p0 = scmp.ne.s32.totalorder %s612_s18, %s608_s17  ;;  %p861_p1 = scmp.eq.s32.totalorder %s678_s3, 0 }
   0xa   : > { %p135_p3 = scmp.eq.s32.totalorder %s400_s21, 1  ;;  %p401_p5 = scmp.ge.s32.totalorder %s620_s20, 1 }
   0xb   : > { %p687_p4 = por %p861_p1, %p42_p0  ;;  %p142_p7 = scmp.lt.s32.totalorder %s620_s20, 3 }
   0xc   : > { %p692_p6 = por %p135_p3, %p42_p0  ;;  %s622_s25 = smov [#allocation6]  }
   0xd   : > { %s864_s22 = scalar_select %p687_p4, 1, 0 }
   0xe   : > { %s865_s23 = scalar_select %p692_p6, 1, 0 }
   0xf   : > { %p697_p8 = pnand %p401_p5, %p142_p7  ;;  %s154_s26 = sshll.u32 %s622_s25, 4  ;;  %s701_s26 = int_to_ptr.vmem [resolvable:$true] %s154_s26 }
  0x10   : > { %s713_s28 = sadd.s32 1, %s620_s20   ;;  %s29_s29 = sadd.s32 1, %s616_s19 }
  0x11   : > { %s866_s24 = scalar_select %p697_p8, 1, 0 }
  0x12   : > { %p437_p9 = pneg %p697_p8  ;;  %s26_s30 = ssub.s32 %s620_s20, %s713_s28 }
  0x13   : > { %s492_s7 = scalar_lea.hbm %s857_s1, 256 }
  0x14   : > { %p708_p11 = pnand %p437_p9, %p861_p1  ;;  %p493_p12 = scmp.ne.s32.totalorder %s857_s1, %s492_s7 }
  0x15   : > { %p499_p5 = scmp.lt.u32.totalorder %s492_s7, %s857_s1 }
  0x16   : > { %p494_p13 = pneg %p708_p11 }
  0x18   : > { %p495_p0 = pnand %p494_p13, %p493_p12 }
  0x1a   : > { %p496_p3 = pneg %p495_p0 }
  0x1c   : > { %p501_p7 = pnand %p499_p5, %p496_p3 }
  0x1e   : > { %504 = shalt.err (!%p501_p7)
}
  0x1f   : > { %s505_s12 = scalar_lea.vmem %s701_s26, 256  ;;  %p513_p2 = scmp.lt.s32.totalorder %s701_s26, %s701_s26 }
  0x20   : > { %p506_p9 = scmp.ne.s32.totalorder %s701_s26, %s505_s12  ;;  %p514_p6 = scmp.lt.s32.totalorder %s505_s12, %s505_s12 }
  0x22   : > { %p508_p10 = pnand %p506_p9, %p494_p13  ;;  %p515_p4 = por %p514_p6, %p513_p2 }
  0x24   : > { %p509_p1 = pneg %p508_p10 }
  0x26   : > { %p516_p8 = pnand %p515_p4, %p509_p1 }
  0x28   : > { %519 = shalt.err (!%p516_p8)
}
  0x29   : > { %s623_s13 = smov 64   ;;  %s624_s14 = smov 4  }
  0x2a   : > { %440 = dma.hbm_to_vmem [thread:$0]  (!%p708_p11), %s857_s1, 256, %s701_s26, [#allocation7], %s623_s13, %s623_s13, %s624_s14  }
  0x2b   : > { %p27_p2 = scmp.eq.s32.totalorder %s26_s30, 0  ;;  %p36_p1 = scmp.ne.s32.totalorder %s616_s19, %s612_s18 }
  0x2c   : > { %p37_p4 = scmp.eq.s32.totalorder %s620_s20, 0  ;;  %p450_p6 = scmp.lt.s32.totalorder %s620_s20, 2 }
  0x2d   : > { %s744_s21 = scalar_select %p27_p2, %s616_s19, %s29_s29  }
  0x2e   : > { %p38_p8 = por %p37_p4, %p36_p1  ;;  %p868_p10 = scmp.eq.s32.totalorder %s678_s3, 1 }
  0x2f   : > { %s174_s5 = sand.u32 1, %s616_s19   ;;  %s405_s6 = sshll.u32 %s620_s20, 7 }
  0x30   : > { %p748_p12 = por %p868_p10, %p36_p1  ;;  %s404_s7 = sshll.u32 %s174_s5, 3 }
  0x31   : > { %s757_s9 = scalar_lea.hbm %s856_s0, %s405_s6  ;;  %s178_s26 = scalar_lea.vmem [#allocation3], %s404_s7 }
  0x32   : > { %s185_s29 = sshll.u32 %s178_s26, 4  ;;  %p759_p11 = pnand %p450_p6, %p38_p8  ;;  %s763_s29 = int_to_ptr.vmem [resolvable:$true] %s185_s29 }
  0x33   : > { %s175_s10 = scalar_lea.sflag [#allocation4], %s174_s5  ;;  %s520_s11 = scalar_lea.hbm %s757_s9, 128 }
  0x34   : > { %p521_p13 = scmp.ne.s32.totalorder %s757_s9, %s520_s11  ;;  %p522_p0 = pneg %p759_p11 }
  0x35   : > { %s525_s14 = scalar_lea.hbm %s856_s0, 256  ;;  %p526_p7 = scmp.lt.u32.totalorder %s757_s9, %s856_s0 }
  0x36   : > { %p523_p3 = pnand %p522_p0, %p521_p13  ;;  %p527_p9 = scmp.lt.u32.totalorder %s525_s14, %s520_s11 }
  0x37   : > { %p529_p1 = scmp.lt.u32.totalorder %s520_s11, %s757_s9 }
  0x38   : > { %p524_p5 = pneg %p523_p3  ;;  %p528_p2 = por %p527_p9, %p526_p7 }
  0x3a   : > { %p530_p4 = por %p529_p1, %p528_p2 }
  0x3c   : > { %p531_p6 = pnand %p530_p4, %p524_p5 }
  0x3e   : > { %534 = shalt.err (!%p531_p6)
}
  0x3f   : > { %s535_s5 = scalar_lea.vmem %s763_s29, 128  ;;  %s625_s6 = smov [#allocation3]  }
  0x40   : > { %p536_p8 = scmp.ne.s32.totalorder %s763_s29, %s535_s5  ;;  %s540_s7 = sshll.u32 %s625_s6, 4  ;;  %s541_s7 = int_to_ptr.vmem [resolvable:$false] %s540_s7 }
  0x41   : > { %s542_s27 = scalar_lea.vmem %s541_s7, 256  ;;  %p543_p3 = scmp.lt.s32.totalorder %s763_s29, %s541_s7 }
  0x42   : > { %p538_p10 = pnand %p536_p8, %p522_p0  ;;  %p544_p7 = scmp.lt.s32.totalorder %s542_s27, %s535_s5 }
  0x44   : > { %p539_p13 = pneg %p538_p10  ;;  %p545_p9 = por %p544_p7, %p543_p3 }
  0x46   : > { %p546_p2 = pnand %p545_p9, %p539_p13 }
  0x48   : > { %549 = shalt.err (!%p546_p2)
}
  0x49   : > { %444 = dma.hbm_to_vmem [thread:$0]  (!%p759_p11), %s757_s9, 128, %s763_s29, %s175_s10  }
  0x4a   : > { %p871_p5 = scmp.ne.s32.totalorder %s866_s24, 0 }
  0x4b   : > { %s793_s8 = sand.u32 (!%p871_p5), 1, %s612_s18   ;;  %p872_p0 = scmp.ne.s32.totalorder (!%p871_p5), %s864_s22, 0 }
  0x4c   : > { %194 = sbr.rel (%p871_p5) target bundleno = 327 (0x147), region = 36  ;;  %s407_s26 = sshll.u32 (!%p871_p5), %s793_s8, 3 }
  0x4d   : > { %s197_s11 = scalar_lea.sflag (!%p871_p5), [#allocation4], %s793_s8  ;;  %s200_s12 = scalar_lea.vmem (!%p871_p5), [#allocation3], %s407_s26 }
  0x53   : > { %595 = dma.done.wait (%p872_p0), %s197_s11, 128  }
  0x54   : > { %597 = vsyncadd (%p872_p0), %s197_s11, 4294967168  ;;  %p873_p1 = scmp.eq.s32.totalorder %s678_s3, 0 }
  0x56   : > { %599 = dma.done.wait (%p873_p1), [#allocation7], 256   ;;  %p874_p11 = pmov %p873_p1 }
  0x57   : > { %v626_v0 = vmov 0.0   ;;  %vm627_vm0 = vmmov 0   ;;  %v490_v1 = vld [vmem:[#allocation6] sm:$0xff]   ;;  %v491_v2 = vld [vmem:[#allocation6 + $0x8] sm:$0xff]   ;;  %v230_v3 = vld [vmem:[%s200_s12] sm:$0xff]  ;;  %vm255_vm1 = vcmask 261120  }
  0x58   : > { %601 = vsyncadd (%p874_p11), [#allocation7], 4294967040  ;;  %421 = vmatprep.subr.bf16.mxu0 %v626_v0  ;;  %425 = vmatprep.mubr.msk.bf16.mxu0 %vm627_vm0, %v626_v0  ;;  %v231_v4 = vpack.c.bf16 %v230_v3, %v230_v3  ;;  %s299_s22 = sld [smem:[#allocation2]]  ;;  %v410_v5 = vld [vmem:[%s858_s2] ss:$0 sm:$0xff]  ;;  %s415_s29 = sshll.u32 %s678_s3, 7 }
  0x59   : > { %422 = vmatpush3.bf16.msra.mxu0 %v490_v1  ;;  %s228_s30 = scalar_lea.vmem [#allocation8], %s407_s26  ;;  %vm304_vm3 = vcmask 523264   ;;  %s812_s15 = scalar_lea.hbm %s860_s4, %s415_s29 }
  0x5a   : > { %423 = vmatprep.subr.bf16.mxu0 %v626_v0  ;;  %s320_s10 = sshll.u32 %s228_s30, 4  ;;  %s307_s3 = scalar_lea.sflag [#allocation5], %s793_s8  ;;  %s814_s10 = int_to_ptr.vmem [resolvable:$true] %s320_s10 }
  0x5b   : > { %s550_s16 = scalar_lea.vmem %s814_s10, 128  ;;  %s628_s5 = smov [#allocation8]  }
  0x5c   : > { %p551_p4 = scmp.ne.s32.totalorder %s814_s10, %s550_s16  ;;  %s554_s6 = sshll.u32 %s628_s5, 4  ;;  %s555_s6 = int_to_ptr.vmem [resolvable:$false] %s554_s6 }
  0x5d   : > { %424 = vmatpush3.bf16.msra.mxu0 %v491_v2  ;;  %s556_s7 = scalar_lea.vmem %s555_s6, 256  ;;  %p557_p10 = scmp.lt.s32.totalorder %s814_s10, %s555_s6 }
  0x5e   : > { %v301_v7 = vstv %s299_s22  ;;  %p552_p6 = pnand %p551_p4, %p748_p12  ;;  %p558_p13 = scmp.lt.s32.totalorder %s556_s7, %s550_s16 }
  0x60   : > { %426 = vmatmul.mubr.msk.bf16.vlgmr.msra.gmra.mrb[0].mxu0 %vm255_vm1, %v231_v4  ;;  %p553_p8 = pneg %p552_p6  ;;  %p559_p3 = por %p558_p13, %p557_p10 }
  0x62   : > { %p560_p7 = pnand %p559_p3, %p553_p8 }
 0x133   : > { %v293_v6 = vpop.f32.mrb[0].mxu0 }
 0x134   : > { %v294_v8 = vadd.f32 %v410_v5, %v293_v6  ;;  %v427_v9 = vpop.f32.mrb[1].mxu0 }
 0x135   : > { %v296_v10 = vpop.f32.mrb[2].mxu0 }
 0x136   : > { %vm300_vm2 = vcmp.ge.f32.partialorder %v294_v8, 0.0  ;;  %v302_v11 = vmul.f32 %v301_v7, %v294_v8  ;;  %v428_v12 = vpop.f32.mrb[3].mxu0 }
 0x138   : > { %v303_v13 = vsel %vm300_vm2, %v294_v8, %v302_v11 }
 0x139   : > { %305 = vst.msk [vmem:[%s228_s30] sm:$0xff] %vm304_vm3, %v303_v13 }
 0x13a   : > { %563 = shalt.err (!%p560_p7)
}
 0x13b   : > { %s564_s27 = scalar_lea.hbm %s812_s15, 128  ;;  %s568_s11 = scalar_lea.hbm %s860_s4, 256 }
 0x13c   : > { %p565_p9 = scmp.ne.s32.totalorder %s812_s15, %s564_s27  ;;  %p569_p0 = scmp.lt.u32.totalorder %s812_s15, %s860_s4 }
 0x13d   : > { %p570_p1 = scmp.lt.u32.totalorder %s568_s11, %s564_s27  ;;  %p572_p4 = scmp.lt.u32.totalorder %s564_s27, %s812_s15 }
 0x13e   : > { %p566_p2 = pnand %p565_p9, %p748_p12 }
 0x13f   : > { %p571_p11 = por %p570_p1, %p569_p0 }
 0x140   : > { %p567_p5 = pneg %p566_p2 }
 0x141   : > { %p573_p6 = por %p572_p4, %p571_p11 }
 0x143   : > { %p574_p8 = pnand %p573_p6, %p567_p5 }
 0x145   : > { %577 = shalt.err (!%p574_p8)
}
 0x146   : > { %435 = dma.vmem_to_hbm [thread:$0]  (%p748_p12), %s814_s10, 128, %s812_s15, %s307_s3  }
 0x147 PF: > { %s332_s24 = sand.u32 1, %s608_s17   ;;  %p875_p10 = scmp.ne.s32.totalorder %s865_s23, 0 }
 0x148   : > { %p876_p13 = scmp.ge.s32.totalorder %s620_s20, 2  ;;  %s333_s9 = scalar_lea.sflag [#allocation5], %s332_s24 }
 0x14a   : > { %p446_p3 = pnand %p876_p13, %p875_p10 }
 0x14c   : > { %603 = dma.done.wait (!%p446_p3), %s333_s9, 128  }
 0x14d   : > { %605 = vsyncadd (!%p446_p3), %s333_s9, 4294967168  ;;  %p19_p7 = scmp.ge.s32.totalorder %s713_s28, 4   ;;  %s877_s17 = smov %s612_s18 }
 0x14e   : > { %s878_s18 = smov %s616_s19  ;;  %s879_s19 = smov %s744_s21 }
 0x14f   : > { %s880_s20 = smov %s713_s28  ;;  %21 = sbr.rel (!%p19_p7) target bundleno = 8 (0x8), region = 85 }
 0x156   :  { %338 = vsyncpa [#allocation4], 1 }
 0x157   :  { %340 = vsyncpa [#allocation4 + $0x1], 1 }
 0x158   :  { %341 = vsyncpa [#allocation7], 1 }
 0x159   :  { %342 = vsyncpa [#allocation5], 1 }
 0x15a   :  { %344 = vsyncpa [#allocation5 + $0x1], 1 }

</bundles_post_ra>
